<compile_context>
chip_gen: v6e
topology: v6e:2x2x1
jax: 0.10.0
libtpu: 0.0.40
codegen_flags: <defaults>
</compile_context>

<pallas_src>
import functools

import jax
import jax.numpy as jnp
from jax import lax
from jax.experimental import pallas as pl
from jax.experimental.pallas import tpu as pltpu


def _cheb_kernel(xT_ref, l_ref, wT_ref, o_ref, *, K, B, l_dtype, out_transposed):
    # xT_ref: (B, Fin, M) f32      = x^T per batch element
    # l_ref : (B, M, M)   l_dtype  = L (NOT transposed)
    # wT_ref: (K, Fout, Fin) f32
    # o_ref : (B, M, Fout) if out_transposed else (B, Fout, M), f32
    dn = (((1,), (1,)), ((), ()))  # contract y's M axis with L's second axis: y @ L^T

    def body(b, carry):
        y0 = xT_ref[b]                                              # (Fin, M) f32
        acc = jnp.dot(wT_ref[0], y0,
                      preferred_element_type=jnp.float32)           # (Fout, M) f32
        if K > 1:
            Lb = l_ref[b]                                           # (M, M) l_dtype
            # y1 = (L @ x0)^T = x0^T @ L^T  (lane-dense (Fin, M) result)
            y1 = lax.dot_general(y0.astype(l_dtype), Lb, dn,
                                 preferred_element_type=jnp.float32)
            acc = acc + jnp.dot(wT_ref[1], y1,
                                preferred_element_type=jnp.float32)
            for k in range(2, K):
                y2 = 2.0 * lax.dot_general(y1.astype(l_dtype), Lb, dn,
                                           preferred_element_type=jnp.float32) - y0
                acc = acc + jnp.dot(wT_ref[k], y2,
                                    preferred_element_type=jnp.float32)
                y0, y1 = y1, y2
        if out_transposed:
            o_ref[b] = jnp.transpose(acc).astype(o_ref.dtype)       # (M, Fout)
        else:
            o_ref[b] = acc.astype(o_ref.dtype)                      # (Fout, M)
        return carry

    lax.fori_loop(0, B, body, 0, unroll=2 if B > 1 else 1)


def _vmem_limit_bytes():
    """Generation-aware scoped-VMEM limit (~40 MiB on v7x, ~96 MiB on v5e/v6e)."""
    try:
        info = pltpu.get_tpu_info()
        cap = int(getattr(info, "vmem_capacity_bytes", 64 * 1024 * 1024))
    except Exception:
        cap = 64 * 1024 * 1024
    return max(16 * 1024 * 1024, min(int(0.75 * cap), cap - 24 * 1024 * 1024))


def _choose_block_batch(N, M, Fin, Fout, K, l_bytes, vmem_limit):
    budget = int(0.75 * vmem_limit)  # headroom for spills / compiler scratch
    # Total double-buffered footprint: L + x + out streams per batch element,
    # plus the resident weight block.
    per_b = 2 * (M * M * l_bytes + Fin * M * 4 + Fout * M * 4)
    fixed = 2 * (K * Fout * Fin * 4)
    b_fit = max(1, (budget - fixed) // max(per_b, 1))
    b_pipe = max(1, N // 4)  # keep >= ~4 grid steps when N allows (v7x megacore + pipelining)
    return int(max(1, min(b_fit, b_pipe, 16, N)))


def dense_cheb_conv(x, L, W, K, *, l_dtype=jnp.bfloat16, block_batch=None):
    """x: (N, M, Fin); L: (N, M, M); W: (Fin*K, Fout) -> (N, M, Fout) f32.

    `l_dtype` is the streaming / MXU dtype for L and the recursion operands
    (bf16 by default; use jnp.float32 for bit-accurate parity with PyTorch).
    Accumulation, the recursion epilogue and the weight application are f32.
    """
    N, M, Fin = x.shape
    FinK, Fout = W.shape
    assert K > 0 and FinK == Fin * K

    # Operand layouts. x is tiny relative to L, so its host transpose is cheap.
    xT = jnp.swapaxes(x, 1, 2).astype(jnp.float32)   # (N, Fin, M)
    Lc = L.astype(l_dtype)                           # (N, M, M) -- no transpose
    # Row index of W is fin*K + k  ->  (Fin, K, Fout)  ->  (K, Fout, Fin)
    Wt = jnp.transpose(W.reshape(Fin, K, Fout), (1, 2, 0)).astype(jnp.float32)

    l_bytes = jnp.dtype(l_dtype).itemsize
    vmem_limit = _vmem_limit_bytes()
    if block_batch is None:
        block_batch = _choose_block_batch(N, M, Fin, Fout, K, l_bytes, vmem_limit)
    B = max(1, min(int(block_batch), N))
    # Largest divisor of N <= B: no jnp.pad (which would copy L through HBM).
    while N % B != 0:
        B -= 1

    out_transposed = (Fout % 128 == 0)
    out_shape = (N, M, Fout) if out_transposed else (N, Fout, M)
    out_block = (B, M, Fout) if out_transposed else (B, Fout, M)

    kernel = functools.partial(_cheb_kernel, K=K, B=B, l_dtype=l_dtype,
                               out_transposed=out_transposed)

    out = pl.pallas_call(
        kernel,
        out_shape=jax.ShapeDtypeStruct(out_shape, jnp.float32),
        grid_spec=pltpu.PrefetchScalarGridSpec(
            num_scalar_prefetch=0,
            grid=(N // B,),
            in_specs=[
                pl.BlockSpec((B, Fin, M), lambda n: (n, 0, 0)),
                pl.BlockSpec((B, M, M), lambda n: (n, 0, 0)),
                pl.BlockSpec((K, Fout, Fin), lambda n: (0, 0, 0)),
            ],
            out_specs=pl.BlockSpec(out_block, lambda n: (n, 0, 0)),
        ),
        compiler_params=pltpu.CompilerParams(
            dimension_semantics=("parallel",),
            vmem_limit_bytes=vmem_limit,
        ),
    )(xT, Lc, Wt)

    if out_transposed:
        return out                       # already (N, M, Fout), lane-dense
    return jnp.swapaxes(out, 1, 2)       # (N, M, Fout)


def _reference(x, L, W, K, l_dtype=None):
    """Pure-JAX replica of the PyTorch forward.  If l_dtype is given, emulate
    the kernel's mixed precision: L and the recursion's matmul operands are
    rounded to l_dtype, all accumulation stays f32."""
    f32 = jnp.float32
    Lc = L.astype(f32) if l_dtype is None else L.astype(l_dtype).astype(f32)

    def rnd(v):
        return v if l_dtype is None else v.astype(l_dtype).astype(f32)

    x0 = x.astype(f32)
    xs = [x0]
    if K > 1:
        x1 = jnp.matmul(Lc, rnd(x0))
        xs.append(x1)
        for _ in range(2, K):
            x2 = 2.0 * jnp.matmul(Lc, rnd(x1)) - x0
            xs.append(x2)
            x0, x1 = x1, x2
    stacked = jnp.stack(xs, axis=0)                  # (K, N, M, Fin)
    stacked = jnp.transpose(stacked, (1, 2, 3, 0))   # (N, M, Fin, K)
    Nn, M, Fin, Kk = stacked.shape
    out = stacked.reshape(Nn * M, Fin * Kk) @ W.astype(f32)
    return out.reshape(Nn, M, W.shape[1])


if __name__ == "__main__":
    # Small shapes consistent with the module: batch=2, points=16, in=4, out=8, K=3
    N, M, Fin, Fout, K = 2, 16, 4, 8, 3

    key = jax.random.PRNGKey(0)
    kx, kl, kw, kw2 = jax.random.split(key, 4)

    x = jax.random.normal(kx, (N, M, Fin), dtype=jnp.float32)
    A = jax.random.normal(kl, (N, M, M), dtype=jnp.float32)
    L = 0.5 * (A + jnp.transpose(A, (0, 2, 1)))      # symmetric Laplacian-like

    # Linear(in_channels*K, out_channels, bias=False); PyTorch weight is
    # (out, in*K) applied as x @ W.T; here we store W_t = W.T of shape
    # (in*K, out).  trunc_normal_(0, 0.1) with default +/-2 cutoffs is ~20
    # sigma, so plain normal*0.1 is an equivalent deterministic init.
    W_t = 0.1 * jax.random.normal(kw, (Fin * K, Fout), dtype=jnp.float32)

    # 1) Exact f32 path vs pure-JAX reference (tight tolerance).
    out_f32 = jax.block_until_ready(dense_cheb_conv(x, L, W_t, K, l_dtype=jnp.float32))
    ref_f32 = _reference(x, L, W_t, K)
    assert out_f32.shape == (N, M, Fout)
    assert jnp.allclose(out_f32, ref_f32, atol=1e-4, rtol=1e-4)

    # 2) Default bf16-streamed-L path vs the mixed-precision reference
    #    (tight-ish) and the exact reference (loose sanity bound).
    out_bf16 = jax.block_until_ready(dense_cheb_conv(x, L, W_t, K))
    ref_mix = _reference(x, L, W_t, K, l_dtype=jnp.bfloat16)
    assert jnp.allclose(out_bf16, ref_mix, atol=1e-2, rtol=1e-2)
    assert jnp.allclose(out_bf16, ref_f32, atol=0.25, rtol=0.05)

    # 3) Lane-dense direct-output path (Fout % 128 == 0) + batch-blocked
    #    fori_loop path (B=2) on the bf16 stream.
    Fout2 = 128
    W2 = 0.1 * jax.random.normal(kw2, (Fin * K, Fout2), dtype=jnp.float32)
    out2 = jax.block_until_ready(dense_cheb_conv(x, L, W2, K, block_batch=2))
    ref2 = _reference(x, L, W2, K, l_dtype=jnp.bfloat16)
    assert out2.shape == (N, M, Fout2)
    assert jnp.allclose(out2, ref2, atol=1e-2, rtol=1e-2)

    # 4) General (non-symmetric) L: transpose folded into the in-kernel
    #    dot_general, no host-side HBM pass over L.
    out3 = jax.block_until_ready(dense_cheb_conv(x, A, W_t, K, l_dtype=jnp.float32))
    ref3 = _reference(x, A, W_t, K)
    assert jnp.allclose(out3, ref3, atol=1e-4, rtol=1e-4)

    print("KERNEL_OK")
</pallas_src>

<mosaic_0001>
module attributes {stable_mosaic.version = 11 : i64} {
  func.func @_cheb_kernel(%arg0: i32, %arg1: memref<1x4x16xf32, #tpu.memory_space<vmem>>, %arg2: memref<1x16x16xf32, #tpu.memory_space<vmem>>, %arg3: memref<3x8x4xf32, #tpu.memory_space<vmem>>, %arg4: memref<1x8x16xf32, #tpu.memory_space<vmem>>) attributes {dimension_semantics = [#tpu.dimension_semantics<parallel>], iteration_bounds = array<i64: 2>, scalar_prefetch = 0 : i64, scratch_operands = 0 : i64, tpu.core_type = #tpu.core_type<tc>, window_params = [{transform_indices = @transform_0, window_bounds = array<i64: 1, 4, 16>}, {transform_indices = @transform_1, window_bounds = array<i64: 1, 16, 16>}, {pipeline_mode = #tpu.pipeline_mode<synchronous>, transform_indices = @transform_2, window_bounds = array<i64: 3, 8, 4>}, {transform_indices = @transform_3, window_bounds = array<i64: 1, 8, 16>}]} {
    %c0_i32 = arith.constant 0 : i32
    %0 = arith.index_cast %c0_i32 : i32 to index
    %c0 = arith.constant 0 : index
    %c0_0 = arith.constant 0 : index
    %1 = vector.load %arg1[%0, %c0, %c0_0] : memref<1x4x16xf32, #tpu.memory_space<vmem>>, vector<1x4x16xf32>
    %2 = vector.shape_cast %1 : vector<1x4x16xf32> to vector<4x16xf32>
    %c0_1 = arith.constant 0 : index
    %c0_2 = arith.constant 0 : index
    %c0_3 = arith.constant 0 : index
    %3 = vector.load %arg3[%c0_1, %c0_2, %c0_3] : memref<3x8x4xf32, #tpu.memory_space<vmem>>, vector<1x8x4xf32>
    %4 = vector.shape_cast %3 : vector<1x8x4xf32> to vector<8x4xf32>
    %cst = arith.constant dense<0.000000e+00> : vector<8x16xf32>
    %5 = tpu.matmul %4, %2, %cst {dimension_numbers = #tpu.dot_dimension_numbers<[1], [0], [0], [1], [0, 0, 1, 1], [], []>} : vector<8x4xf32>, vector<4x16xf32>, vector<8x16xf32> -> vector<8x16xf32>
    %6 = arith.index_cast %c0_i32 : i32 to index
    %c0_4 = arith.constant 0 : index
    %c0_5 = arith.constant 0 : index
    %7 = vector.load %arg2[%6, %c0_4, %c0_5] : memref<1x16x16xf32, #tpu.memory_space<vmem>>, vector<1x16x16xf32>
    %8 = vector.shape_cast %7 : vector<1x16x16xf32> to vector<16x16xf32>
    %cst_6 = arith.constant dense<0.000000e+00> : vector<4x16xf32>
    %9 = tpu.matmul %2, %8, %cst_6 {dimension_numbers = #tpu.dot_dimension_numbers<[1], [1], [0], [0], [0, 0, 1, 0], [], []>} : vector<4x16xf32>, vector<16x16xf32>, vector<4x16xf32> -> vector<4x16xf32>
    %c1 = arith.constant 1 : index
    %c0_7 = arith.constant 0 : index
    %c0_8 = arith.constant 0 : index
    %10 = vector.load %arg3[%c1, %c0_7, %c0_8] : memref<3x8x4xf32, #tpu.memory_space<vmem>>, vector<1x8x4xf32>
    %11 = vector.shape_cast %10 : vector<1x8x4xf32> to vector<8x4xf32>
    %cst_9 = arith.constant dense<0.000000e+00> : vector<8x16xf32>
    %12 = tpu.matmul %11, %9, %cst_9 {dimension_numbers = #tpu.dot_dimension_numbers<[1], [0], [0], [1], [0, 0, 1, 1], [], []>} : vector<8x4xf32>, vector<4x16xf32>, vector<8x16xf32> -> vector<8x16xf32>
    %13 = arith.addf %5, %12 : vector<8x16xf32>
    %cst_10 = arith.constant dense<0.000000e+00> : vector<4x16xf32>
    %14 = tpu.matmul %9, %8, %cst_10 {dimension_numbers = #tpu.dot_dimension_numbers<[1], [1], [0], [0], [0, 0, 1, 0], [], []>} : vector<4x16xf32>, vector<16x16xf32>, vector<4x16xf32> -> vector<4x16xf32>
    %cst_11 = arith.constant 2.000000e+00 : f32
    %15 = vector.broadcast %cst_11 : f32 to vector<4x16xf32>
    %16 = arith.mulf %15, %14 : vector<4x16xf32>
    %17 = arith.subf %16, %2 : vector<4x16xf32>
    %c2 = arith.constant 2 : index
    %c0_12 = arith.constant 0 : index
    %c0_13 = arith.constant 0 : index
    %18 = vector.load %arg3[%c2, %c0_12, %c0_13] : memref<3x8x4xf32, #tpu.memory_space<vmem>>, vector<1x8x4xf32>
    %19 = vector.shape_cast %18 : vector<1x8x4xf32> to vector<8x4xf32>
    %cst_14 = arith.constant dense<0.000000e+00> : vector<8x16xf32>
    %20 = tpu.matmul %19, %17, %cst_14 {dimension_numbers = #tpu.dot_dimension_numbers<[1], [0], [0], [1], [0, 0, 1, 1], [], []>} : vector<8x4xf32>, vector<4x16xf32>, vector<8x16xf32> -> vector<8x16xf32>
    %21 = arith.addf %13, %20 : vector<8x16xf32>
    %22 = arith.index_cast %c0_i32 : i32 to index
    %c0_15 = arith.constant 0 : index
    %c0_16 = arith.constant 0 : index
    %23 = vector.load %arg4[%22, %c0_15, %c0_16] : memref<1x8x16xf32, #tpu.memory_space<vmem>>, vector<1x8x16xf32>
    %24 = vector.shape_cast %23 : vector<1x8x16xf32> to vector<8x16xf32>
    %25 = vector.shape_cast %21 : vector<8x16xf32> to vector<1x8x16xf32>
    tpu.vector_store %arg4[%22, %c0_15, %c0_16], %25 {strides = array<i32>} : memref<1x8x16xf32, #tpu.memory_space<vmem>>, vector<1x8x16xf32>,
    %c1_i32 = arith.constant 1 : i32
    return
  }
  func.func @transform_0(%arg0: i32) -> (i32, i32, i32) {
    %c0_i32 = arith.constant 0 : i32
    %c0_i32_0 = arith.constant 0 : i32
    %c0_i32_1 = arith.constant 0 : i32
    return %arg0, %c0_i32, %c0_i32_0 : i32, i32, i32
  }
  func.func @transform_1(%arg0: i32) -> (i32, i32, i32) {
    %c0_i32 = arith.constant 0 : i32
    %c0_i32_0 = arith.constant 0 : i32
    %c0_i32_1 = arith.constant 0 : i32
    return %arg0, %c0_i32, %c0_i32_0 : i32, i32, i32
  }
  func.func @transform_2(%arg0: i32) -> (i32, i32, i32) {
    %c0_i32 = arith.constant 0 : i32
    %c0_i32_0 = arith.constant 0 : i32
    %c0_i32_1 = arith.constant 0 : i32
    %c0_i32_2 = arith.constant 0 : i32
    return %c0_i32, %c0_i32_0, %c0_i32_1 : i32, i32, i32
  }
  func.func @transform_3(%arg0: i32) -> (i32, i32, i32) {
    %c0_i32 = arith.constant 0 : i32
    %c0_i32_0 = arith.constant 0 : i32
    %c0_i32_1 = arith.constant 0 : i32
    return %arg0, %c0_i32, %c0_i32_0 : i32, i32, i32
  }
}

</mosaic_0001>

<bundles_post_ra>
// kernel: tpu_custom_call.1
= control target key start
LH: loop header
LB: loop body
LE: loop exit
PB: predicated region body
PF: predicated region fallthrough
CT: control target
= control target key end

     0   :  { %8 = vsyncpa [#allocation3], 0  ;;  %s1111_s0 = inlined_call_operand.hbm [shape: f32[2,4,16], index: 0, kind: input, shape index: {}]   ;;  %s1112_s1 = inlined_call_operand.vmem [shape: f32[2,16,16], index: 1, kind: input, shape index: {}]   ;;  %s1113_s2 = inlined_call_operand.vmem [shape: f32[3,8,4], index: 2, kind: input, shape index: {}]   ;;  %s1114_s3 = inlined_call_operand.hbm [shape: f32[2,8,16], index: 3, kind: output, shape index: {}]  }
   0x1   :  { %10 = vsyncpa [#allocation3 + $0x1], 0 }
   0x2   :  { %11 = vsyncpa [#allocation4], 0 }
   0x3   :  { %13 = vsyncpa [#allocation4 + $0x1], 0  ;;  %s931_s12 = smov 0   ;;  %s933_s13 = smov 0  }
   0x4   :  { %s935_s14 = smov 0   ;;  %s937_s15 = smov 0  }
   0x5 LB: > { %s952_s16 = sadd.s32 4294967295, %s905_s15   ;;  %s695_s17 = sadd.s32 4294967294, %s905_s15   ;;  %s905_s15 = sphi %s937_s15, %s1131_s15   ;;  %s901_s14 = sphi %s935_s14, %s1130_s14   ;;  %s897_s13 = sphi %s933_s13, %s1129_s13   ;;  %s893_s12 = sphi %s931_s12, %s1128_s12  }
   0x6   : > { %s956_s18 = sadd.s32 1, %s905_s15   ;;  %s26_s19 = sadd.s32 1, %s901_s14 }
   0x7   : > { %s23_s20 = ssub.s32 %s905_s15, %s956_s18  ;;  %p33_p0 = scmp.ne.s32.totalorder %s901_s14, %s897_s13 }
   0x8   : > { %p24_p1 = scmp.eq.s32.totalorder %s23_s20, 0  ;;  %p34_p2 = scmp.eq.s32.totalorder %s905_s15, 0 }
   0x9   : > { %p39_p3 = scmp.ne.s32.totalorder %s897_s13, %s893_s12  ;;  %p40_p4 = scmp.eq.s32.totalorder %s952_s16, 0 }
   0xa   : > { %s968_s21 = scalar_select %p24_p1, %s901_s14, %s26_s19  }
   0xb   : > { %p970_p5 = por %p34_p2, %p33_p0  ;;  %p974_p6 = por %p40_p4, %p39_p3 }
   0xc   : > { %p110_p7 = scmp.eq.s32.totalorder %s952_s16, 1  ;;  %p116_p8 = scmp.eq.s32.totalorder %s695_s17, 1 }
   0xd   : > { %s1118_s23 = scalar_select %p974_p6, 1, 0 }
   0xe   : > { %p777_p10 = scmp.lt.s32.totalorder %s905_s15, 2  ;;  %p981_p11 = por %p110_p7, %p33_p0 }
   0xf   : > { %p985_p12 = por %p116_p8, %p39_p3  ;;  %s139_s26 = sand.u32 1, %s901_s14  }
  0x10   : > { %s1119_s24 = scalar_select %p981_p11, 1, 0 }
  0x11   : > { %s1120_s25 = scalar_select %p985_p12, 1, 0 }
  0x12   : > { %s699_s27 = sshll.u32 %s905_s15, 6  ;;  %s698_s28 = sshll.u32 %s139_s26, 2 }
  0x13   : > { %s994_s4 = scalar_lea.hbm %s1111_s0, %s699_s27  ;;  %s143_s5 = scalar_lea.vmem [#allocation2], %s698_s28 }
  0x14   : > { %s150_s6 = sshll.u32 %s143_s5, 4  ;;  %p998_p13 = pnand %p777_p10, %p970_p5  ;;  %s1002_s6 = int_to_ptr.vmem [resolvable:$true] %s150_s6 }
  0x15   : > { %s140_s8 = scalar_lea.sflag [#allocation3], %s139_s26  ;;  %s813_s9 = scalar_lea.hbm %s994_s4, 64 }
  0x16   : > { %p814_p2 = scmp.ne.s32.totalorder %s994_s4, %s813_s9  ;;  %p815_p3 = pneg %p998_p13 }
  0x17   : > { %s818_s17 = scalar_lea.hbm %s1111_s0, 128  ;;  %p819_p5 = scmp.lt.s32.totalorder %s994_s4, %s1111_s0 }
  0x18   : > { %p816_p4 = pnand %p815_p3, %p814_p2  ;;  %p820_p8 = scmp.lt.s32.totalorder %s818_s17, %s813_s9 }
  0x1a   : > { %p817_p7 = pneg %p816_p4  ;;  %p821_p10 = por %p820_p8, %p819_p5 }
  0x1c   : > { %p822_p9 = pnand %p821_p10, %p817_p7 }
  0x1e   : > { %825 = shalt.err (!%p822_p9)
}
  0x1f   : > { %s826_s22 = scalar_lea.vmem %s1002_s6, 64  ;;  %s907_s26 = smov [#allocation2]  }
  0x20   : > { %p827_p0 = scmp.ne.s32.totalorder %s1002_s6, %s826_s22  ;;  %s831_s27 = sshll.u32 %s907_s26, 4  ;;  %s832_s27 = int_to_ptr.vmem [resolvable:$false] %s831_s27 }
  0x21   : > { %s833_s28 = scalar_lea.vmem %s832_s27, 128  ;;  %p834_p4 = scmp.lt.s32.totalorder %s1002_s6, %s832_s27 }
  0x22   : > { %p829_p1 = pnand %p827_p0, %p815_p3  ;;  %p835_p12 = scmp.lt.s32.totalorder %s833_s28, %s826_s22 }
  0x24   : > { %p830_p2 = pneg %p829_p1  ;;  %p836_p11 = por %p835_p12, %p834_p4 }
  0x26   : > { %p837_p6 = pnand %p836_p11, %p830_p2 }
  0x28   : > { %840 = shalt.err (!%p837_p6)
}
  0x29   : > { %772 = dma.hbm_to_vmem [thread:$0]  (!%p998_p13), %s994_s4, 64, %s1002_s6, %s140_s8  }
  0x2a   : > { %p1122_p9 = scmp.lt.s32.totalorder %s905_s15, 3  ;;  %p1123_p7 = scmp.ge.s32.totalorder %s905_s15, 1 }
  0x2c   : > { %p164_p0 = pnand %p1123_p7, %p1122_p9 }
  0x2d   : > { %s1029_s29 = sand.u32 (!%p164_p0), 1, %s897_s13   ;;  %p1124_p6 = scmp.ne.s32.totalorder (!%p164_p0), %s1118_s23, 0 }
  0x2e   : > { %167 = sbr.rel (%p164_p0) target bundleno = 678 (0x2a6), region = 32  ;;  %s701_s30 = sshll.u32 (!%p164_p0), %s1029_s29, 2 }
  0x2f   : > { %s170_s5 = scalar_lea.sflag (!%p164_p0), [#allocation3], %s1029_s29  ;;  %s173_s9 = scalar_lea.vmem (!%p164_p0), [#allocation2], %s701_s30 }
  0x33   : > { %884 = dma.done.wait (%p1124_p6), %s170_s5, 64  }
  0x34   : > { %886 = vsyncadd (%p1124_p6), %s170_s5, 4294967232  ;;  %p201_p11 = scmp.lt.s32.totalorder %s952_s16, 1  ;;  %v908_v0 = vmov 0.0   ;;  %vm909_vm0 = vmmov 0   ;;  %vm210_vm1 = vcmask 130048   ;;  %vm296_vm2 = vcmask 1043456  }
  0x35   : > { %736 = vmatprep.subr.mxu0 %v908_v0  ;;  %740 = vmatprep.mubr.msk.f32.mxu0 %vm909_vm0, %v908_v0  ;;  %v206_v3 = vld [vmem:[%s173_s9] sm:$0xf]  ;;  %v708_v4 = vld [vmem:[%s1113_s2 + $0x8] sm:$0xff]  ;;  %vm292_vm3 = vcmask 31744   ;;  %v716_v17 = vld [vmem:[%s1113_s2 + $0x10] sm:$0xff]  ;;  %s702_s26 = sshll.u32 %s1029_s29, 3 }
  0x36   : > { %s202_s4 = scalar_select %p201_p11, %s952_s16, 1  ;;  %743 = vmatprep.subr.mxu1 %v908_v0  ;;  %745 = vmatprep.mubr.msk.f32.mxu1 %vm909_vm0, %v908_v0  ;;  %v207_v7 = vld [vmem:[%s1113_s2] sm:$0xff] }
  0x37   : > { %s720_s27 = sshll.u32 %s952_s16, 7  ;;  %s200_s28 = scalar_lea.vmem [#allocation5], %s702_s26 }
  0x38   : > { %s723_s6 = sshll.u32 %s202_s4, 4  ;;  %s613_s30 = sshll.u32 %s200_s28, 4  ;;  %s614_s30 = int_to_ptr.vmem [resolvable:$true] %s613_s30 }
  0x39   : > { %s205_s10 = scalar_lea.vmem %s1112_s1, %s723_s6  ;;  %s1073_s4 = scalar_lea.hbm %s1114_s3, %s720_s27 }
  0x3a   : > { %v209_v1 = vld [vmem:[%s205_s10 + $0x8] sm:$0xff]  ;;  %v208_v2 = vld [vmem:[%s205_s10] sm:$0xff]  ;;  %s600_s6 = scalar_lea.sflag [#allocation4], %s1029_s29  ;;  %s841_s7 = scalar_lea.vmem %s614_s30, 128 }
  0x3b   : > { %737 = vmatpush3.xpose.msk.msra.mxu0 %vm210_vm1, %v209_v1  ;;  %p842_p12 = scmp.ne.s32.totalorder %s614_s30, %s841_s7  ;;  %p1125_p13 = scmp.ne.s32.totalorder %s1119_s24, 0 }
  0x3c   : > { %738 = vmatprep.subr.mxu0 %v908_v0  ;;  %s910_s16 = smov [#allocation5]  }
  0x3d   : > { %p843_p1 = pnand %p842_p12, %p1125_p13  ;;  %s845_s8 = sshll.u32 %s910_s16, 4  ;;  %s846_s8 = int_to_ptr.vmem [resolvable:$false] %s845_s8 }
  0x3e   : > { %s847_s10 = scalar_lea.vmem %s846_s8, 256  ;;  %p848_p5 = scmp.lt.s32.totalorder %s614_s30, %s846_s8 }
  0x3f   : > { %739 = vmatpush3.xpose.msk.msra.mxu0 %vm210_vm1, %v208_v2  ;;  %p844_p3 = pneg %p843_p1  ;;  %p849_p8 = scmp.lt.s32.totalorder %s847_s10, %s841_s7 }
  0x40   : > { %760 = vmatprep.subr.mxu0 %v908_v0 }
  0x41   : > { %p850_p10 = por %p849_p8, %p848_p5 }
  0x42   : > { %741 = vmatmul.mubr.msk.f32.vlgmr.msra.gmra.mxu0 %vm210_vm1, %v206_v3 }
  0x43   : > { %762 = vmatprep.mubr.msk.f32.mxu0 %vm909_vm0, %v908_v0  ;;  %p851_p2 = pnand %p850_p10, %p844_p3 }
 0x102   : > { %v286_v5 = vpop.f32.mrf.mxu0 }
 0x103   : > { %744 = vmatpush3.msk.msra.mxu1 %vm296_vm2, %v286_v5 }
 0x104   : > { %v742_v6 = vpop.f32.mrf.mxu0  ;;  %746 = vmatmul.mubr.msk.f32.vlgmr.msra.gmra.mxu1 %vm292_vm3, %v708_v4  ;;  %748 = vmatprep.subr.mxu1 %v908_v0 }
 0x105   : > { %749 = vmatpush3.msk.msra.mxu1 %vm296_vm2, %v206_v3  ;;  %750 = vmatprep.mubr.msk.f32.mxu1 %vm909_vm0, %v908_v0 }
 0x106   : > { %753 = vmatprep.subr.mxu1 %v908_v0 }
 0x108   : > { %751 = vmatmul.mubr.msk.f32.vlgmr.msra.gmra.mxu1 %vm292_vm3, %v207_v7 }
 0x109   : > { %754 = vmatpush3.xpose.msk.msra.mxu1 %vm210_vm1, %v209_v1  ;;  %757 = vmatprep.mubr.msk.f32.mxu1 %vm909_vm0, %v908_v0 }
 0x10a   : > { %755 = vmatprep.subr.mxu1 %v908_v0 }
 0x10d   : > { %756 = vmatpush3.xpose.msk.msra.mxu1 %vm210_vm1, %v208_v2 }
 0x110   : > { %758 = vmatmul.mubr.msk.f32.vlgmr.msra.gmra.mxu1 %vm210_vm1, %v286_v5 }
 0x1c4   : > { %v366_v8 = vpop.f32.mrf.mxu1 }
 0x1c6   : > { %v747_v9 = vpop.f32.mrf.mxu1 }
 0x1c8   : > { %v441_v10 = vpop.f32.mrf.mxu1 }
 0x1c9   : > { %v442_v11 = vadd.f32 %v441_v10, %v366_v8 }
 0x1ca   : > { %v752_v12 = vpop.f32.mrf.mxu1 }
 0x1d0   : > { %v513_v13 = vpop.f32.mrf.mxu1 }
 0x1d1   : > { %v517_v14 = vmul.f32 2.0, %v513_v13 }
 0x1d2   : > { %v759_v15 = vpop.f32.mrf.mxu1 }
 0x1d3   : > { %v518_v16 = vsub.f32 %v517_v14, %v206_v3 }
 0x1d5   : > { %761 = vmatpush3.msk.msra.mxu0 %vm296_vm2, %v518_v16 }
 0x1d6   : > { %763 = vmatmul.mubr.msk.f32.vlgmr.msra.gmra.mxu0 %vm292_vm3, %v716_v17 }
 0x296   : > { %v593_v18 = vpop.f32.mrf.mxu0 }
 0x297   : > { %v597_v19 = vadd.f32 %v593_v18, %v442_v11 }
 0x298   : > { %v764_v20 = vpop.f32.mrf.mxu0 }
 0x299   : > { %598 = vst.msk [vmem:[%s200_s28] sm:$0xff] %vm210_vm1, %v597_v19 }
 0x29a   : > { %854 = shalt.err (!%p851_p2)
}
 0x29b   : > { %s855_s23 = scalar_lea.hbm %s1073_s4, 128  ;;  %s859_s17 = scalar_lea.hbm %s1114_s3, 256 }
 0x29c   : > { %p856_p4 = scmp.ne.s32.totalorder %s1073_s4, %s855_s23  ;;  %p860_p0 = scmp.lt.s32.totalorder %s1073_s4, %s1114_s3 }
 0x29d   : > { %p861_p6 = scmp.lt.s32.totalorder %s859_s17, %s855_s23 }
 0x29e   : > { %p857_p9 = pnand %p856_p4, %p1125_p13 }
 0x29f   : > { %p862_p11 = por %p861_p6, %p860_p0 }
 0x2a0   : > { %p858_p7 = pneg %p857_p9 }
 0x2a2   : > { %p863_p12 = pnand %p862_p11, %p858_p7 }
 0x2a4   : > { %866 = shalt.err (!%p863_p12)
}
 0x2a5   : > { %767 = dma.vmem_to_hbm [thread:$0]  (%p1125_p13), %s614_s30, 128, %s1073_s4, %s600_s6  }
 0x2a6 PF: > { %s625_s22 = sand.u32 1, %s893_s12   ;;  %p1126_p1 = scmp.ne.s32.totalorder %s1120_s25, 0 }
 0x2a7   : > { %p1127_p3 = scmp.ge.s32.totalorder %s905_s15, 2  ;;  %s626_s26 = scalar_lea.sflag [#allocation4], %s625_s22 }
 0x2a9   : > { %p774_p5 = pnand %p1127_p3, %p1126_p1 }
 0x2ab   : > { %p775_p8 = pneg %p774_p5 }
 0x2ad   : > { %888 = dma.done.wait (%p775_p8), %s626_s26, 128  }
 0x2ae   : > { %890 = vsyncadd (%p775_p8), %s626_s26, 4294967168  ;;  %p16_p10 = scmp.ge.s32.totalorder %s956_s18, 4   ;;  %s1128_s12 = smov %s897_s13 }
 0x2af   : > { %s1129_s13 = smov %s901_s14  ;;  %s1130_s14 = smov %s968_s21 }
 0x2b0   : > { %s1131_s15 = smov %s956_s18  ;;  %18 = sbr.rel (!%p16_p10) target bundleno = 5 (0x5), region = 82 }
 0x2b5   :  { %631 = vsyncpa [#allocation3], 1 }
 0x2b6   :  { %633 = vsyncpa [#allocation3 + $0x1], 1 }
 0x2b7   :  { %634 = vsyncpa [#allocation4], 1 }
 0x2b8   :  { %636 = vsyncpa [#allocation4 + $0x1], 1 }

</bundles_post_ra>
